<compile_context>
chip_gen: v5e
topology: v5e:2x2
jax: 0.10.0
libtpu: 0.0.40
codegen_flags: <defaults>
</compile_context>

<pallas_src>
import math

import jax
import jax.numpy as jnp
from jax import lax
from jax.experimental import pallas as pl
from jax.experimental.pallas import tpu as pltpu


def _round_up(x: int, m: int) -> int:
    return ((x + m - 1) // m) * m


def linear_relu_kernel(x_ref, w_ref, b_ref, o_ref):
    # x_ref: (tm, K); w_ref: (N_pad, K) PyTorch layout; b_ref: (1, N_pad).
    # Contract over K of both operands -> (tm, N_pad) on the MXU, f32 accumulate.
    y = lax.dot_general(
        x_ref[...],
        w_ref[...],
        dimension_numbers=(((1,), (1,)), ((), ())),
        preferred_element_type=jnp.float32,
    )
    y = y + b_ref[...]                      # broadcast bias over rows
    o_ref[...] = jnp.maximum(y, 0.0).astype(o_ref.dtype)


def block_forward(x, w, b, *, tm_max: int = 512):
    """Pallas equivalent of F.relu(nn.Linear(inplanes, outplanes)(x)).

    x: (B, inplanes) float32
    w: (outplanes, inplanes) float32   (PyTorch nn.Linear weight layout)
    b: (outplanes,) float32
    """
    B, K = x.shape
    N = w.shape[0]

    # Row tile: multiple of 8 sublanes, capped for VMEM headroom; batch padded
    # to a whole number of tiles.
    tm = min(tm_max, _round_up(B, 8))
    B_pad = _round_up(B, tm)
    # Lane-dense output: pad N to a multiple of the 128-lane vreg width.
    N_pad = _round_up(N, 128)

    x_p = x if B_pad == B else jnp.pad(x, ((0, B_pad - B), (0, 0)))
    w_p = w if N_pad == N else jnp.pad(w, ((0, N_pad - N), (0, 0)))
    b_p = b if N_pad == N else jnp.pad(b, (0, N_pad - N))
    b2 = b_p.reshape(1, N_pad)

    grid = (B_pad // tm,)

    out = pl.pallas_call(
        linear_relu_kernel,
        out_shape=jax.ShapeDtypeStruct((B_pad, N_pad), jnp.float32),
        grid=grid,
        in_specs=[
            # Batch-tiled activations: new block per grid step (pipelined DMA).
            pl.BlockSpec((tm, K), lambda i: (i, 0)),
            # Weights / bias: same block index every step -> stay VMEM-resident.
            pl.BlockSpec((N_pad, K), lambda i: (0, 0)),
            pl.BlockSpec((1, N_pad), lambda i: (0, 0)),
        ],
        out_specs=pl.BlockSpec((tm, N_pad), lambda i: (i, 0)),
        compiler_params=pltpu.CompilerParams(
            dimension_semantics=("parallel",),
        ),
    )(x_p, w_p, b2)

    # Strip batch / lane padding.
    return out[:B, :N]


if __name__ == "__main__":
    # Shapes implied by the module: x is (batch, inplanes); Linear(inplanes, outplanes).
    batch, inplanes, outplanes = 8, 32, 64

    key = jax.random.PRNGKey(0)
    kx, kw, kb = jax.random.split(key, 3)

    x = jax.random.normal(kx, (batch, inplanes), dtype=jnp.float32)

    # Deterministic init mimicking nn.Linear's default: U(-1/sqrt(in), 1/sqrt(in)).
    bound = 1.0 / math.sqrt(inplanes)
    w = jax.random.uniform(
        kw, (outplanes, inplanes), minval=-bound, maxval=bound, dtype=jnp.float32
    )  # PyTorch layout (out, in) — used directly, no transpose needed.
    b = jax.random.uniform(
        kb, (outplanes,), minval=-bound, maxval=bound, dtype=jnp.float32
    )

    out = block_forward(x, w, b)
    out = jax.block_until_ready(out)

    # Reference check against plain JAX (same math as F.relu(self.fc(x))).
    ref = jnp.maximum(x @ w.T + b[None, :], 0.0)
    assert out.shape == (batch, outplanes)
    assert jnp.allclose(out, ref, atol=1e-5, rtol=1e-5)

    print("KERNEL_OK")
</pallas_src>

<mosaic_0001>
module attributes {stable_mosaic.version = 11 : i64} {
  func.func @linear_relu_kernel(%arg0: i32, %arg1: memref<8x32xf32, #tpu.memory_space<vmem>>, %arg2: memref<128x32xf32, #tpu.memory_space<vmem>>, %arg3: memref<1x128xf32, #tpu.memory_space<vmem>>, %arg4: memref<8x128xf32, #tpu.memory_space<vmem>>) attributes {dimension_semantics = [#tpu.dimension_semantics<parallel>], iteration_bounds = array<i64: 1>, scalar_prefetch = 0 : i64, scratch_operands = 0 : i64, tpu.core_type = #tpu.core_type<tc>, window_params = [{transform_indices = @transform_0, window_bounds = array<i64: 8, 32>}, {pipeline_mode = #tpu.pipeline_mode<synchronous>, transform_indices = @transform_1, window_bounds = array<i64: 128, 32>}, {pipeline_mode = #tpu.pipeline_mode<synchronous>, transform_indices = @transform_2, window_bounds = array<i64: 1, 128>}, {transform_indices = @transform_3, window_bounds = array<i64: 8, 128>}]} {
    %c0 = arith.constant 0 : index
    %c0_0 = arith.constant 0 : index
    %0 = vector.load %arg1[%c0, %c0_0] : memref<8x32xf32, #tpu.memory_space<vmem>>, vector<8x32xf32>
    %c0_1 = arith.constant 0 : index
    %c0_2 = arith.constant 0 : index
    %1 = vector.load %arg2[%c0_1, %c0_2] : memref<128x32xf32, #tpu.memory_space<vmem>>, vector<128x32xf32>
    %cst = arith.constant dense<0.000000e+00> : vector<8x128xf32>
    %2 = tpu.matmul %0, %1, %cst {dimension_numbers = #tpu.dot_dimension_numbers<[1], [1], [0], [0], [0, 0, 1, 0], [], []>} : vector<8x32xf32>, vector<128x32xf32>, vector<8x128xf32> -> vector<8x128xf32>
    %c0_3 = arith.constant 0 : index
    %c0_4 = arith.constant 0 : index
    %3 = vector.load %arg3[%c0_3, %c0_4] : memref<1x128xf32, #tpu.memory_space<vmem>>, vector<1x128xf32>
    %4 = vector.broadcast %3 : vector<1x128xf32> to vector<8x128xf32>
    %5 = arith.addf %2, %4 : vector<8x128xf32>
    %cst_5 = arith.constant 0.000000e+00 : f32
    %6 = vector.broadcast %cst_5 : f32 to vector<8x128xf32>
    %7 = arith.maximumf %5, %6 : vector<8x128xf32>
    %c0_6 = arith.constant 0 : index
    %c0_7 = arith.constant 0 : index
    %8 = vector.load %arg4[%c0_6, %c0_7] : memref<8x128xf32, #tpu.memory_space<vmem>>, vector<8x128xf32>
    tpu.vector_store %arg4[%c0_6, %c0_7], %7 {strides = array<i32>} : memref<8x128xf32, #tpu.memory_space<vmem>>, vector<8x128xf32>,
    return
  }
  func.func @transform_0(%arg0: i32) -> (i32, i32) {
    %c0_i32 = arith.constant 0 : i32
    %c0_i32_0 = arith.constant 0 : i32
    return %arg0, %c0_i32 : i32, i32
  }
  func.func @transform_1(%arg0: i32) -> (i32, i32) {
    %c0_i32 = arith.constant 0 : i32
    %c0_i32_0 = arith.constant 0 : i32
    %c0_i32_1 = arith.constant 0 : i32
    return %c0_i32, %c0_i32_0 : i32, i32
  }
  func.func @transform_2(%arg0: i32) -> (i32, i32) {
    %c0_i32 = arith.constant 0 : i32
    %c0_i32_0 = arith.constant 0 : i32
    %c0_i32_1 = arith.constant 0 : i32
    return %c0_i32, %c0_i32_0 : i32, i32
  }
  func.func @transform_3(%arg0: i32) -> (i32, i32) {
    %c0_i32 = arith.constant 0 : i32
    %c0_i32_0 = arith.constant 0 : i32
    return %arg0, %c0_i32 : i32, i32
  }
}

</mosaic_0001>

<bundles_post_ra>
// kernel: tpu_custom_call.1
= control target key start
LH: loop header
LB: loop body
LE: loop exit
PB: predicated region body
PF: predicated region fallthrough
CT: control target
= control target key end

     0   :  { %vm36_vm0 = vcmask 261120   ;;  %s266_s0 = inlined_call_operand.vmem [shape: f32[8,32], index: 0, kind: input, shape index: {}]   ;;  %s267_s1 = inlined_call_operand.vmem [shape: f32[128,32], index: 1, kind: input, shape index: {}]   ;;  %s268_s2 = inlined_call_operand.vmem [shape: f32[1,128], index: 2, kind: input, shape index: {}]   ;;  %s269_s3 = inlined_call_operand.hbm [shape: f32[8,128], index: 3, kind: output, shape index: {}]  }
   0x1   :  { %v31_v0 = vld [vmem:[%s267_s1 + $0x78] sm:$0xff]  ;;  %v30_v1 = vld [vmem:[%s267_s1 + $0x70] sm:$0xff] }
   0x2   :  { %126 = vmatpush.xpose.msk.msra.mxu0 %vm36_vm0, %v31_v0 }
   0x3   :  { %8 = vsyncpa [#allocation3], 0  ;;  %v29_v2 = vld [vmem:[%s267_s1 + $0x68] sm:$0xff]  ;;  %v28_v3 = vld [vmem:[%s267_s1 + $0x60] sm:$0xff]  ;;  %s171_s21 = smov [#allocation2]   ;;  %s117_s25 = sshll.u32 %s269_s3, 4  ;;  %s118_s25 = int_to_ptr.hbm [resolvable:$true] %s117_s25 }
   0x4   :  { %v27_v4 = vld [vmem:[%s267_s1 + $0x58] sm:$0xff]  ;;  %v26_v5 = vld [vmem:[%s267_s1 + $0x50] sm:$0xff]  ;;  %v25_v6 = vld [vmem:[%s267_s1 + $0x48] sm:$0xff]  ;;  %s115_s22 = sshll.u32 %s171_s21, 4  ;;  %s116_s22 = int_to_ptr.vmem [resolvable:$true] %s115_s22 }
   0x5   :  { %v24_v7 = vld [vmem:[%s267_s1 + $0x40] sm:$0xff]  ;;  %v23_v8 = vld [vmem:[%s267_s1 + $0x38] sm:$0xff]  ;;  %v22_v9 = vld [vmem:[%s267_s1 + $0x30] sm:$0xff] }
   0x6   :  { %127 = vmatpush.xpose.msk.msra.mxu0 %vm36_vm0, %v30_v1  ;;  %v21_v10 = vld [vmem:[%s267_s1 + $0x28] sm:$0xff]  ;;  %v20_v11 = vld [vmem:[%s267_s1 + $0x20] sm:$0xff]  ;;  %v19_v12 = vld [vmem:[%s267_s1 + $0x18] sm:$0xff] }
   0x7   :  { %v18_v13 = vld [vmem:[%s267_s1 + $0x10] sm:$0xff]  ;;  %v17_v14 = vld [vmem:[%s267_s1 + $0x8] sm:$0xff]  ;;  %v16_v15 = vld [vmem:[%s267_s1] sm:$0xff] }
   0x8   :  { %v15_v16 = vld [vmem:[%s266_s0] sm:$0xff] }
   0x9   :  { %v144_v17 = vld [vmem:[%s268_s2] ss:$0 sm:$0xff] }
   0xa   :  { %128 = vmatpush.xpose.msk.msra.mxu0 %vm36_vm0, %v29_v2 }
   0xe   :  { %129 = vmatpush.xpose.msk.msra.mxu0 %vm36_vm0, %v28_v3 }
  0x12   :  { %130 = vmatpush.xpose.msk.msra.mxu0 %vm36_vm0, %v27_v4 }
  0x16   :  { %131 = vmatpush.xpose.msk.msra.mxu0 %vm36_vm0, %v26_v5 }
  0x1a   :  { %132 = vmatpush.xpose.msk.msra.mxu0 %vm36_vm0, %v25_v6 }
  0x1e   :  { %133 = vmatpush.xpose.msk.msra.mxu0 %vm36_vm0, %v24_v7 }
  0x22   :  { %134 = vmatpush.xpose.msk.msra.mxu0 %vm36_vm0, %v23_v8 }
  0x26   :  { %135 = vmatpush.xpose.msk.msra.mxu0 %vm36_vm0, %v22_v9 }
  0x2a   :  { %136 = vmatpush.xpose.msk.msra.mxu0 %vm36_vm0, %v21_v10 }
  0x2e   :  { %137 = vmatpush.xpose.msk.msra.mxu0 %vm36_vm0, %v20_v11 }
  0x32   :  { %138 = vmatpush.xpose.msk.msra.mxu0 %vm36_vm0, %v19_v12 }
  0x36   :  { %139 = vmatpush.xpose.msk.msra.mxu0 %vm36_vm0, %v18_v13 }
  0x3a   :  { %140 = vmatpush.xpose.msk.msra.mxu0 %vm36_vm0, %v17_v14 }
  0x3e   :  { %141 = vmatpush.xpose.msk.msra.mxu0 %vm36_vm0, %v16_v15 }
  0x41   :  { %142 = vmatmul.msk.f32.vlgmr.msra.gmra.mxu0 %vm36_vm0, %v15_v16 }
  0xbe   :  { %v105_v18 = vpop.f32.mrf.mxu0 }
  0xbf   :  { %v106_v19 = vadd.f32 %v144_v17, %v105_v18 }
  0xc1   :  { %v108_v20 = vmax.f32 %v106_v19, 0.0 }
  0xc3   :  { %109 = vst [vmem:[#allocation2] sm:$0xff] %v108_v20 }
  0xc4   :  { %120 = dma.vmem_to_hbm [thread:$0]  %s116_s22, 128, %s118_s25, [#allocation3]  }
  0xc5   :  { %169 = dma.done.wait [#allocation3], 128  }
  0xc6   :  { %170 = vsyncadd [#allocation3], 4294967168 }
  0xc7   :  { %125 = vsyncpa [#allocation3], 1 }

</bundles_post_ra>
